<compile_context>
chip_gen: v7x
topology: tpu7x:2x2x1
jax: 0.10.0
libtpu: 0.0.40
codegen_flags: <defaults>
</compile_context>

<pallas_src>
import jax
import jax.numpy as jnp
from jax import lax
from jax.experimental import pallas as pl
from jax.experimental.pallas import tpu as pltpu


_NEG_BIG = -1e30  # finite "-inf" sentinel (keeps masked math free of inf/nan)


def clip_loss_kernel(scale_ref,                      # SMEM f32[2] = [t/2, 1/t]
                     cat_tile_ref,                   # VMEM (tm, 2D) row tile of [img|txt]
                     txt_tile_ref,                   # VMEM (tm, D)  row tile of txt
                     cat_full_ref,                   # VMEM (B, 2D)  full [img|txt]
                     img_full_ref,                   # VMEM (B, D)   full img
                     out_ref,                        # VMEM (1, 1)   scalar loss
                     col_m, col_s, col_t, part):     # VMEM scratch accumulators
    i = pl.program_id(0)
    n_steps = pl.num_programs(0)
    tm = cat_tile_ref.shape[0]
    B = img_full_ref.shape[0]

    @pl.when(i == 0)
    def _():
        col_m[...] = jnp.full_like(col_m, _NEG_BIG)   # running column max
        col_s[...] = jnp.zeros_like(col_s)            # running column sum-exp
        col_t[...] = jnp.zeros_like(col_t)            # column sums of targets
        part[...] = jnp.zeros_like(part)              # partial loss sum

    # Two MXU passes (3*B^2*D MACs total), operands in their input dtype,
    # f32 accumulation.  Contracting the feature-concatenated pair gives
    # img@img.T + txt@txt.T directly.  Scales applied in f32 post-accumulation.
    sim = lax.dot_general(
        cat_tile_ref[...], cat_full_ref[...],
        dimension_numbers=(((1,), (1,)), ((), ())),
        preferred_element_type=jnp.float32) * scale_ref[0]            # (tm, B)
    logits = lax.dot_general(
        txt_tile_ref[...], img_full_ref[...],
        dimension_numbers=(((1,), (1,)), ((), ())),
        preferred_element_type=jnp.float32) * scale_ref[1]            # (tm, B)

    if B % tm != 0:
        # Row-tail mask for the last (padded) grid block.
        row_ids = i * tm + lax.broadcasted_iota(jnp.int32, (tm, 1), 0)
        valid = row_ids < B                                           # (tm, 1)
        valid_f = valid.astype(jnp.float32)
        sim = jnp.where(valid, sim, 0.0)
        logits_row = jnp.where(valid, logits, 0.0)
        logits_col = jnp.where(valid, logits, _NEG_BIG)
    else:
        valid_f = None
        logits_row = logits
        logits_col = logits

    # targets = softmax(sim, axis=-1); normalization via EUP approx reciprocal.
    sim_max = jnp.max(sim, axis=-1, keepdims=True)
    e_sim = jnp.exp(sim - sim_max)
    targets = e_sim * pl.reciprocal(
        jnp.sum(e_sim, axis=-1, keepdims=True), approx=True)
    if valid_f is not None:
        targets = targets * valid_f

    # Row log-sum-exp of logits (texts_loss path), numerically stable.
    row_max = jnp.max(logits_row, axis=-1, keepdims=True)
    lse_row = jnp.log(jnp.sum(jnp.exp(logits_row - row_max),
                              axis=-1, keepdims=True)) + row_max

    # Accumulate sum(targets * (2*logits - lse_row)); the column-LSE term is
    # separable: sum(targets * lse_col) == sum_j col_t[j] * lse_col[j].
    part[...] += jnp.sum(targets * (2.0 * logits_row - lse_row), keepdims=True)
    col_t[...] += jnp.sum(targets, axis=0, keepdims=True)             # (1, B)

    # Online column log-sum-exp across row tiles (transpose-free images_loss:
    # log_softmax(logits.T, -1) is the column log-softmax of logits).
    tile_max = jnp.max(logits_col, axis=0, keepdims=True)             # (1, B)
    new_m = jnp.maximum(col_m[...], tile_max)
    col_s[...] = (col_s[...] * jnp.exp(col_m[...] - new_m)
                  + jnp.sum(jnp.exp(logits_col - new_m), axis=0, keepdims=True))
    col_m[...] = new_m

    @pl.when(i == n_steps - 1)
    def _():
        lse_col = col_m[...] + jnp.log(col_s[...])                    # (1, B)
        total = part[...] - jnp.sum(col_t[...] * lse_col, keepdims=True)
        # loss.mean() == -(sum texts_loss + sum images_loss) / (2B)
        out_ref[...] = -total / (2.0 * B)


def clip_loss(image_embeddings, text_embeddings, temperature, *, tm=256):
    B, D = image_embeddings.shape
    assert text_embeddings.shape == (B, D)

    # Row tile: full batch if small, otherwise a multiple of 8 (tail masked).
    tm = min(tm, B)
    if tm != B:
        tm = max(8, (tm // 8) * 8)
    num_tiles = pl.cdiv(B, tm)

    # Feature-concatenated operand built in plain JAX (no in-kernel concat).
    cat = jnp.concatenate([image_embeddings, text_embeddings], axis=1)  # (B, 2D)

    # Temperature-derived scales via SMEM scalar prefetch (f32, applied to the
    # f32-accumulated matmuls; temperature changes don't retrace the kernel).
    t = jnp.asarray(temperature, jnp.float32)
    scales = jnp.stack([t * 0.5, 1.0 / t])

    itemsize = jnp.dtype(image_embeddings.dtype).itemsize
    # Explicit VMEM budget (scoped defaults 16/32 MiB are below need at large
    # B); clamped to v7x's 64 MiB physical VMEM.
    vmem_est = (2 * tm * 3 * D * itemsize * 2      # double-buffered row tiles
                + 2 * B * 3 * D * itemsize         # constant full-block operands
                + 8 * tm * B * 4                   # f32 (tm, B) intermediates
                + 16 * B * 4 + (1 << 20))          # column scratches + slack
    vmem_limit = int(min(max(vmem_est, 32 << 20), 64 << 20))

    cost = pl.CostEstimate(
        flops=2 * 3 * B * B * D,
        transcendentals=3 * B * B,
        bytes_accessed=int(6 * B * D * itemsize) + 4,
    )

    # TODO(synk): for very large B (where the (B, 2D) operand or the (tm, B)
    # tiles no longer fit VMEM) add a column grid axis with a two-pass column
    # LSE; on v7x the row-tile axis could then be marked 'parallel' with
    # per-core partial col-LSE/loss combined in a tiny second call, and the
    # constant-index full blocks given pipeline_mode=pl.Buffered(1).
    out = pl.pallas_call(
        clip_loss_kernel,
        out_shape=jax.ShapeDtypeStruct((1, 1), jnp.float32),
        grid_spec=pltpu.PrefetchScalarGridSpec(
            num_scalar_prefetch=1,
            grid=(num_tiles,),
            in_specs=[
                pl.BlockSpec((tm, 2 * D), lambda i, s: (i, 0)),   # cat row tile
                pl.BlockSpec((tm, D), lambda i, s: (i, 0)),       # txt row tile
                pl.BlockSpec((B, 2 * D), lambda i, s: (0, 0)),    # cat, full (DMA'd once)
                pl.BlockSpec((B, D), lambda i, s: (0, 0)),        # img, full (DMA'd once)
            ],
            out_specs=pl.BlockSpec((1, 1), lambda i, s: (0, 0)),
            scratch_shapes=[
                pltpu.VMEM((1, B), jnp.float32),    # running column max
                pltpu.VMEM((1, B), jnp.float32),    # running column sum-exp
                pltpu.VMEM((1, B), jnp.float32),    # column sums of targets
                pltpu.VMEM((1, 1), jnp.float32),    # partial loss accumulator
            ],
        ),
        compiler_params=pltpu.CompilerParams(
            dimension_semantics=("arbitrary",),
            vmem_limit_bytes=vmem_limit,
        ),
        cost_estimate=cost,
    )(scales, cat, text_embeddings, cat, image_embeddings)
    return out[0, 0]


def clip_loss_ref(image_embeddings, text_embeddings, temperature):
    """Pure-JAX reference matching the PyTorch module semantics."""
    img = image_embeddings.astype(jnp.float32)
    txt = text_embeddings.astype(jnp.float32)
    logits = txt @ img.T / temperature
    images_similarity = img @ img.T
    texts_similarity = txt @ txt.T
    targets = jax.nn.softmax(
        (images_similarity + texts_similarity) / 2.0 * temperature, axis=-1)
    texts_loss = jnp.sum(-targets * jax.nn.log_softmax(logits, axis=-1), axis=1)
    images_loss = jnp.sum(
        -targets.T * jax.nn.log_softmax(logits.T, axis=-1), axis=1)
    return jnp.mean((images_loss + texts_loss) / 2.0)


if __name__ == "__main__":
    key = jax.random.PRNGKey(0)
    k_img, k_txt = jax.random.split(key)

    B, D = 8, 32          # small batch of embeddings, hidden dim 32
    temperature = 0.07    # CLIPLoss(temperature=0.07)

    image_embeddings = jax.random.normal(k_img, (B, D), dtype=jnp.float32)
    text_embeddings = jax.random.normal(k_txt, (B, D), dtype=jnp.float32)

    loss = clip_loss(image_embeddings, text_embeddings, temperature)
    loss = jax.block_until_ready(loss)

    ref = clip_loss_ref(image_embeddings, text_embeddings, temperature)
    assert jnp.allclose(loss, ref, rtol=2e-3, atol=2e-3), (loss, ref)

    print("KERNEL_OK")
</pallas_src>

<mosaic_0001>
module attributes {stable_mosaic.version = 11 : i64} {
  func.func @clip_loss_kernel(%arg0: i32, %arg1: memref<2xf32, #tpu.memory_space<smem>>, %arg2: memref<8x64xf32, #tpu.memory_space<vmem>>, %arg3: memref<8x32xf32, #tpu.memory_space<vmem>>, %arg4: memref<8x64xf32, #tpu.memory_space<vmem>>, %arg5: memref<8x32xf32, #tpu.memory_space<vmem>>, %arg6: memref<1x1xf32, #tpu.memory_space<vmem>>, %arg7: memref<1x8xf32, #tpu.memory_space<vmem>>, %arg8: memref<1x8xf32, #tpu.memory_space<vmem>>, %arg9: memref<1x8xf32, #tpu.memory_space<vmem>>, %arg10: memref<1x1xf32, #tpu.memory_space<vmem>>) attributes {dimension_semantics = [#tpu.dimension_semantics<arbitrary>], iteration_bounds = array<i64: 1>, scalar_prefetch = 1 : i64, scratch_operands = 4 : i64, tpu.core_type = #tpu.core_type<tc>, window_params = [{transform_indices = @transform_0, window_bounds = array<i64: 8, 64>}, {transform_indices = @transform_1, window_bounds = array<i64: 8, 32>}, {pipeline_mode = #tpu.pipeline_mode<synchronous>, transform_indices = @transform_2, window_bounds = array<i64: 8, 64>}, {pipeline_mode = #tpu.pipeline_mode<synchronous>, transform_indices = @transform_3, window_bounds = array<i64: 8, 32>}, {pipeline_mode = #tpu.pipeline_mode<synchronous>, transform_indices = @transform_4, window_bounds = array<i64: 1, 1>}]} {
    %c0_i32 = arith.constant 0 : i32
    %0 = arith.cmpi eq, %arg0, %c0_i32 : i32
    %1 = arith.extui %0 : i1 to i32
    %c0_i32_0 = arith.constant 0 : i32
    %2 = arith.cmpi ne, %1, %c0_i32_0 : i32
    scf.if %2 {
      %cst_39 = arith.constant -1.000000e+30 : f32
      %72 = vector.broadcast %cst_39 : f32 to vector<1x8xf32>
      %c0_40 = arith.constant 0 : index
      %c0_41 = arith.constant 0 : index
      %73 = vector.load %arg7[%c0_40, %c0_41] : memref<1x8xf32, #tpu.memory_space<vmem>>, vector<1x8xf32>
      tpu.vector_store %arg7[%c0_40, %c0_41], %72 {strides = array<i32>} : memref<1x8xf32, #tpu.memory_space<vmem>>, vector<1x8xf32>,
      %cst_42 = arith.constant 0.000000e+00 : f32
      %74 = vector.broadcast %cst_42 : f32 to vector<1x8xf32>
      %c0_43 = arith.constant 0 : index
      %c0_44 = arith.constant 0 : index
      %75 = vector.load %arg8[%c0_43, %c0_44] : memref<1x8xf32, #tpu.memory_space<vmem>>, vector<1x8xf32>
      tpu.vector_store %arg8[%c0_43, %c0_44], %74 {strides = array<i32>} : memref<1x8xf32, #tpu.memory_space<vmem>>, vector<1x8xf32>,
      %cst_45 = arith.constant 0.000000e+00 : f32
      %76 = vector.broadcast %cst_45 : f32 to vector<1x8xf32>
      %c0_46 = arith.constant 0 : index
      %c0_47 = arith.constant 0 : index
      %77 = vector.load %arg9[%c0_46, %c0_47] : memref<1x8xf32, #tpu.memory_space<vmem>>, vector<1x8xf32>
      tpu.vector_store %arg9[%c0_46, %c0_47], %76 {strides = array<i32>} : memref<1x8xf32, #tpu.memory_space<vmem>>, vector<1x8xf32>,
      %cst_48 = arith.constant 0.000000e+00 : f32
      %78 = vector.broadcast %cst_48 : f32 to vector<1x1xf32>
      %c0_49 = arith.constant 0 : index
      %c0_50 = arith.constant 0 : index
      %79 = vector.load %arg10[%c0_49, %c0_50] : memref<1x1xf32, #tpu.memory_space<vmem>>, vector<1x1xf32>
      tpu.vector_store %arg10[%c0_49, %c0_50], %78 {strides = array<i32>} : memref<1x1xf32, #tpu.memory_space<vmem>>, vector<1x1xf32>,
    } else {
    }
    %c0 = arith.constant 0 : index
    %c0_1 = arith.constant 0 : index
    %3 = vector.load %arg2[%c0, %c0_1] : memref<8x64xf32, #tpu.memory_space<vmem>>, vector<8x64xf32>
    %c0_2 = arith.constant 0 : index
    %c0_3 = arith.constant 0 : index
    %4 = vector.load %arg4[%c0_2, %c0_3] : memref<8x64xf32, #tpu.memory_space<vmem>>, vector<8x64xf32>
    %cst = arith.constant dense<0.000000e+00> : vector<8x8xf32>
    %5 = tpu.matmul %3, %4, %cst {dimension_numbers = #tpu.dot_dimension_numbers<[1], [1], [0], [0], [0, 0, 1, 0], [], []>} : vector<8x64xf32>, vector<8x64xf32>, vector<8x8xf32> -> vector<8x8xf32>
    %c0_4 = arith.constant 0 : index
    %6 = memref.load %arg1[%c0_4] : memref<2xf32, #tpu.memory_space<smem>>
    %7 = vector.broadcast %6 : f32 to vector<8x8xf32>
    %8 = arith.mulf %5, %7 : vector<8x8xf32>
    %c0_5 = arith.constant 0 : index
    %c0_6 = arith.constant 0 : index
    %9 = vector.load %arg3[%c0_5, %c0_6] : memref<8x32xf32, #tpu.memory_space<vmem>>, vector<8x32xf32>
    %c0_7 = arith.constant 0 : index
    %c0_8 = arith.constant 0 : index
    %10 = vector.load %arg5[%c0_7, %c0_8] : memref<8x32xf32, #tpu.memory_space<vmem>>, vector<8x32xf32>
    %cst_9 = arith.constant dense<0.000000e+00> : vector<8x8xf32>
    %11 = tpu.matmul %9, %10, %cst_9 {dimension_numbers = #tpu.dot_dimension_numbers<[1], [1], [0], [0], [0, 0, 1, 0], [], []>} : vector<8x32xf32>, vector<8x32xf32>, vector<8x8xf32> -> vector<8x8xf32>
    %c1 = arith.constant 1 : index
    %12 = memref.load %arg1[%c1] : memref<2xf32, #tpu.memory_space<smem>>
    %13 = vector.broadcast %12 : f32 to vector<8x8xf32>
    %14 = arith.mulf %11, %13 : vector<8x8xf32>
    %cst_10 = arith.constant dense<0xFF800000> : vector<8xf32>
    %15 = vector.multi_reduction <maximumf>, %8, %cst_10 [1] : vector<8x8xf32> to vector<8xf32>
    %16 = vector.shape_cast %15 : vector<8xf32> to vector<8x1xf32>
    %17 = vector.broadcast %16 : vector<8x1xf32> to vector<8x8xf32>
    %18 = arith.subf %8, %17 : vector<8x8xf32>
    %19 = math.exp %18 : vector<8x8xf32>
    %cst_11 = arith.constant dense<0.000000e+00> : vector<8xf32>
    %20 = vector.multi_reduction <add>, %19, %cst_11 [1] : vector<8x8xf32> to vector<8xf32>
    %21 = vector.shape_cast %20 : vector<8xf32> to vector<8x1xf32>
    %22 = tpu.reciprocal %21 {approx = true} : vector<8x1xf32> -> vector<8x1xf32>
    %23 = vector.broadcast %22 : vector<8x1xf32> to vector<8x8xf32>
    %24 = arith.mulf %19, %23 : vector<8x8xf32>
    %cst_12 = arith.constant dense<0xFF800000> : vector<8xf32>
    %25 = vector.multi_reduction <maximumf>, %14, %cst_12 [1] : vector<8x8xf32> to vector<8xf32>
    %26 = vector.shape_cast %25 : vector<8xf32> to vector<8x1xf32>
    %27 = vector.broadcast %26 : vector<8x1xf32> to vector<8x8xf32>
    %28 = arith.subf %14, %27 : vector<8x8xf32>
    %29 = math.exp %28 : vector<8x8xf32>
    %cst_13 = arith.constant dense<0.000000e+00> : vector<8xf32>
    %30 = vector.multi_reduction <add>, %29, %cst_13 [1] : vector<8x8xf32> to vector<8xf32>
    %31 = vector.shape_cast %30 : vector<8xf32> to vector<8x1xf32>
    %32 = math.log %31 : vector<8x1xf32>
    %33 = arith.addf %32, %26 : vector<8x1xf32>
    %c0_14 = arith.constant 0 : index
    %c0_15 = arith.constant 0 : index
    %34 = vector.load %arg10[%c0_14, %c0_15] : memref<1x1xf32, #tpu.memory_space<vmem>>, vector<1x1xf32>
    %cst_16 = arith.constant 2.000000e+00 : f32
    %35 = vector.broadcast %cst_16 : f32 to vector<8x8xf32>
    %36 = arith.mulf %35, %14 : vector<8x8xf32>
    %37 = vector.broadcast %33 : vector<8x1xf32> to vector<8x8xf32>
    %38 = arith.subf %36, %37 : vector<8x8xf32>
    %39 = arith.mulf %24, %38 : vector<8x8xf32>
    %40 = vector.shape_cast %39 : vector<8x8xf32> to vector<1x8x8xf32>
    %cst_17 = arith.constant dense<0.000000e+00> : vector<1xf32>
    %41 = vector.multi_reduction <add>, %40, %cst_17 [1, 2] : vector<1x8x8xf32> to vector<1xf32>
    %42 = vector.shape_cast %41 : vector<1xf32> to vector<1x1x1xf32>
    %43 = vector.extract %42[0, 0, 0] : f32 from vector<1x1x1xf32>
    %44 = vector.broadcast %43 : f32 to vector<1x1xf32>
    %45 = arith.addf %34, %44 : vector<1x1xf32>
    %c0_18 = arith.constant 0 : index
    %c0_19 = arith.constant 0 : index
    %46 = vector.load %arg10[%c0_18, %c0_19] : memref<1x1xf32, #tpu.memory_space<vmem>>, vector<1x1xf32>
    tpu.vector_store %arg10[%c0_18, %c0_19], %45 {strides = array<i32>} : memref<1x1xf32, #tpu.memory_space<vmem>>, vector<1x1xf32>,
    %c0_20 = arith.constant 0 : index
    %c0_21 = arith.constant 0 : index
    %47 = vector.load %arg9[%c0_20, %c0_21] : memref<1x8xf32, #tpu.memory_space<vmem>>, vector<1x8xf32>
    %cst_22 = arith.constant dense<0.000000e+00> : vector<8xf32>
    %48 = vector.multi_reduction <add>, %24, %cst_22 [0] : vector<8x8xf32> to vector<8xf32>
    %49 = vector.shape_cast %48 : vector<8xf32> to vector<1x8xf32>
    %50 = arith.addf %47, %49 : vector<1x8xf32>
    %c0_23 = arith.constant 0 : index
    %c0_24 = arith.constant 0 : index
    %51 = vector.load %arg9[%c0_23, %c0_24] : memref<1x8xf32, #tpu.memory_space<vmem>>, vector<1x8xf32>
    tpu.vector_store %arg9[%c0_23, %c0_24], %50 {strides = array<i32>} : memref<1x8xf32, #tpu.memory_space<vmem>>, vector<1x8xf32>,
    %cst_25 = arith.constant dense<0xFF800000> : vector<8xf32>
    %52 = vector.multi_reduction <maximumf>, %14, %cst_25 [0] : vector<8x8xf32> to vector<8xf32>
    %53 = vector.shape_cast %52 : vector<8xf32> to vector<1x8xf32>
    %c0_26 = arith.constant 0 : index
    %c0_27 = arith.constant 0 : index
    %54 = vector.load %arg7[%c0_26, %c0_27] : memref<1x8xf32, #tpu.memory_space<vmem>>, vector<1x8xf32>
    %55 = arith.maximumf %54, %53 : vector<1x8xf32>
    %c0_28 = arith.constant 0 : index
    %c0_29 = arith.constant 0 : index
    %56 = vector.load %arg8[%c0_28, %c0_29] : memref<1x8xf32, #tpu.memory_space<vmem>>, vector<1x8xf32>
    %c0_30 = arith.constant 0 : index
    %c0_31 = arith.constant 0 : index
    %57 = vector.load %arg7[%c0_30, %c0_31] : memref<1x8xf32, #tpu.memory_space<vmem>>, vector<1x8xf32>
    %58 = arith.subf %57, %55 : vector<1x8xf32>
    %59 = math.exp %58 : vector<1x8xf32>
    %60 = arith.mulf %56, %59 : vector<1x8xf32>
    %61 = vector.broadcast %55 : vector<1x8xf32> to vector<8x8xf32>
    %62 = arith.subf %14, %61 : vector<8x8xf32>
    %63 = math.exp %62 : vector<8x8xf32>
    %cst_32 = arith.constant dense<0.000000e+00> : vector<8xf32>
    %64 = vector.multi_reduction <add>, %63, %cst_32 [0] : vector<8x8xf32> to vector<8xf32>
    %65 = vector.shape_cast %64 : vector<8xf32> to vector<1x8xf32>
    %66 = arith.addf %60, %65 : vector<1x8xf32>
    %c0_33 = arith.constant 0 : index
    %c0_34 = arith.constant 0 : index
    %67 = vector.load %arg8[%c0_33, %c0_34] : memref<1x8xf32, #tpu.memory_space<vmem>>, vector<1x8xf32>
    tpu.vector_store %arg8[%c0_33, %c0_34], %66 {strides = array<i32>} : memref<1x8xf32, #tpu.memory_space<vmem>>, vector<1x8xf32>,
    %c0_35 = arith.constant 0 : index
    %c0_36 = arith.constant 0 : index
    %68 = vector.load %arg7[%c0_35, %c0_36] : memref<1x8xf32, #tpu.memory_space<vmem>>, vector<1x8xf32>
    tpu.vector_store %arg7[%c0_35, %c0_36], %55 {strides = array<i32>} : memref<1x8xf32, #tpu.memory_space<vmem>>, vector<1x8xf32>,
    %c0_i32_37 = arith.constant 0 : i32
    %69 = arith.cmpi eq, %arg0, %c0_i32_37 : i32
    %70 = arith.extui %69 : i1 to i32
    %c0_i32_38 = arith.constant 0 : i32
    %71 = arith.cmpi ne, %70, %c0_i32_38 : i32
    scf.if %71 {
      %c0_39 = arith.constant 0 : index
      %c0_40 = arith.constant 0 : index
      %72 = vector.load %arg7[%c0_39, %c0_40] : memref<1x8xf32, #tpu.memory_space<vmem>>, vector<1x8xf32>
      %c0_41 = arith.constant 0 : index
      %c0_42 = arith.constant 0 : index
      %73 = vector.load %arg8[%c0_41, %c0_42] : memref<1x8xf32, #tpu.memory_space<vmem>>, vector<1x8xf32>
      %74 = math.log %73 : vector<1x8xf32>
      %75 = arith.addf %72, %74 : vector<1x8xf32>
      %c0_43 = arith.constant 0 : index
      %c0_44 = arith.constant 0 : index
      %76 = vector.load %arg10[%c0_43, %c0_44] : memref<1x1xf32, #tpu.memory_space<vmem>>, vector<1x1xf32>
      %c0_45 = arith.constant 0 : index
      %c0_46 = arith.constant 0 : index
      %77 = vector.load %arg9[%c0_45, %c0_46] : memref<1x8xf32, #tpu.memory_space<vmem>>, vector<1x8xf32>
      %78 = arith.mulf %77, %75 : vector<1x8xf32>
      %79 = vector.shape_cast %78 : vector<1x8xf32> to vector<1x1x8xf32>
      %cst_47 = arith.constant dense<0.000000e+00> : vector<1xf32>
      %80 = vector.multi_reduction <add>, %79, %cst_47 [1, 2] : vector<1x1x8xf32> to vector<1xf32>
      %81 = vector.shape_cast %80 : vector<1xf32> to vector<1x1x1xf32>
      %82 = vector.extract %81[0, 0, 0] : f32 from vector<1x1x1xf32>
      %83 = vector.broadcast %82 : f32 to vector<1x1xf32>
      %84 = arith.subf %76, %83 : vector<1x1xf32>
      %cst_48 = arith.constant 0.000000e+00 : f32
      %85 = vector.broadcast %cst_48 : f32 to vector<1x1xf32>
      %86 = arith.subf %85, %84 : vector<1x1xf32>
      %cst_49 = arith.constant 1.600000e+01 : f32
      %87 = vector.broadcast %cst_49 : f32 to vector<1x1xf32>
      %88 = arith.divf %86, %87 : vector<1x1xf32>
      %c0_50 = arith.constant 0 : index
      %c0_51 = arith.constant 0 : index
      %89 = vector.load %arg6[%c0_50, %c0_51] : memref<1x1xf32, #tpu.memory_space<vmem>>, vector<1x1xf32>
      tpu.vector_store %arg6[%c0_50, %c0_51], %88 {strides = array<i32>} : memref<1x1xf32, #tpu.memory_space<vmem>>, vector<1x1xf32>,
    } else {
    }
    return
  }
  func.func @transform_0(%arg0: i32, %arg1: memref<2xf32, #tpu.memory_space<smem>>) -> (i32, i32) {
    %c0_i32 = arith.constant 0 : i32
    %c0_i32_0 = arith.constant 0 : i32
    return %arg0, %c0_i32 : i32, i32
  }
  func.func @transform_1(%arg0: i32, %arg1: memref<2xf32, #tpu.memory_space<smem>>) -> (i32, i32) {
    %c0_i32 = arith.constant 0 : i32
    %c0_i32_0 = arith.constant 0 : i32
    return %arg0, %c0_i32 : i32, i32
  }
  func.func @transform_2(%arg0: i32, %arg1: memref<2xf32, #tpu.memory_space<smem>>) -> (i32, i32) {
    %c0_i32 = arith.constant 0 : i32
    %c0_i32_0 = arith.constant 0 : i32
    %c0_i32_1 = arith.constant 0 : i32
    return %c0_i32, %c0_i32_0 : i32, i32
  }
  func.func @transform_3(%arg0: i32, %arg1: memref<2xf32, #tpu.memory_space<smem>>) -> (i32, i32) {
    %c0_i32 = arith.constant 0 : i32
    %c0_i32_0 = arith.constant 0 : i32
    %c0_i32_1 = arith.constant 0 : i32
    return %c0_i32, %c0_i32_0 : i32, i32
  }
  func.func @transform_4(%arg0: i32, %arg1: memref<2xf32, #tpu.memory_space<smem>>) -> (i32, i32) {
    %c0_i32 = arith.constant 0 : i32
    %c0_i32_0 = arith.constant 0 : i32
    %c0_i32_1 = arith.constant 0 : i32
    return %c0_i32, %c0_i32_0 : i32, i32
  }
}

</mosaic_0001>

<bundles_post_ra>
// kernel: tpu_custom_call.1
= control target key start
LH: loop header
LB: loop body
LE: loop exit
PB: predicated region body
PF: predicated region fallthrough
CT: control target
= control target key end

     0   :  { %s642_s0 = inlined_call_operand.hbm [shape: f32[2], index: 0, kind: input, shape index: {}]   ;;  %s643_s1 = inlined_call_operand.hbm [shape: f32[8,64], index: 1, kind: input, shape index: {}]   ;;  %s644_s2 = inlined_call_operand.hbm [shape: f32[8,32], index: 2, kind: input, shape index: {}]   ;;  %s645_s3 = inlined_call_operand.vmem [shape: f32[8,64], index: 3, kind: input, shape index: {}]   ;;  %s646_s4 = inlined_call_operand.hbm [shape: f32[8,32], index: 4, kind: input, shape index: {}]   ;;  %s647_s5 = inlined_call_operand.hbm [shape: f32[1,1], index: 5, kind: output, shape index: {}]  }
   0x1   :  { %s405_s20 = scalar_lea.hbm %s642_s0, 16 }
   0x2   :  { %p406_p0 = scmp.ne.s32.totalorder %s642_s0, %s405_s20  ;;  %p409_p1 = scmp.lt.u32.totalorder %s405_s20, %s642_s0 }
   0x4   :  { %p411_p2 = pnand %p409_p1, %p406_p0 }
   0x6   :  { %414 = shalt.err (!%p411_p2)  }
   0x7   :  { %s511_s25 = smov [#allocation7]  }
   0x8   :  { %11 = dma.hbm_to_smem %s642_s0, 16, %s511_s25, [#allocation6] }
   0x9   :  { %503 = dma.done.wait [#allocation6], 16 }
   0xa   :  { %504 = vsyncadd [#allocation6], 4294967280 }
   0xb   :  { %13 = sfence }
   0xc   :  { %14 = vsyncpa [#allocation9], 0 }
   0xd   :  { %15 = vsyncpa [#allocation12], 0 }
   0xe   :  { %16 = vsyncpa [#allocation10], 0  ;;  %s512_s28 = smov [#allocation11]   ;;  %s513_s30 = smov [#allocation8]  }
   0xf   :  { %s33_s29 = sshll.u32 %s512_s28, 4  ;;  %s23_s6 = sshll.u32 %s513_s30, 4  ;;  %s34_s29 = int_to_ptr.vmem [resolvable:$true] %s33_s29  ;;  %s24_s6 = int_to_ptr.vmem [resolvable:$true] %s23_s6 }
  0x10   :  { %s415_s9 = scalar_lea.hbm %s644_s2, 128 }
  0x11   :  { %p416_p3 = scmp.ne.s32.totalorder %s644_s2, %s415_s9  ;;  %p419_p4 = scmp.lt.u32.totalorder %s415_s9, %s644_s2 }
  0x13   :  { %p421_p5 = pnand %p419_p4, %p416_p3 }
  0x15   :  { %424 = shalt.err (!%p421_p5)
}
  0x16   :  { %s425_s13 = scalar_lea.vmem %s34_s29, 128  ;;  %p430_p7 = scmp.lt.s32.totalorder %s34_s29, %s34_s29 }
  0x17   :  { %p426_p6 = scmp.ne.s32.totalorder %s34_s29, %s425_s13  ;;  %p431_p8 = scmp.lt.s32.totalorder %s425_s13, %s425_s13 }
  0x19   :  { %p432_p9 = por %p431_p8, %p430_p7 }
  0x1b   :  { %p433_p10 = pnand %p432_p9, %p426_p6 }
  0x1d   :  { %436 = shalt.err (!%p433_p10)
}
  0x1e   :  { %36 = dma.hbm_to_vmem [thread:$0]  %s644_s2, 128, %s34_s29, [#allocation12]  }
  0x1f   :  { %s437_s18 = scalar_lea.hbm %s643_s1, 128 }
  0x20   :  { %p438_p11 = scmp.ne.s32.totalorder %s643_s1, %s437_s18  ;;  %p441_p12 = scmp.lt.u32.totalorder %s437_s18, %s643_s1 }
  0x22   :  { %p443_p13 = pnand %p441_p12, %p438_p11 }
  0x24   :  { %446 = shalt.err (!%p443_p13)
}
  0x25   :  { %s447_s23 = scalar_lea.vmem %s24_s6, 128  ;;  %p452_p1 = scmp.lt.s32.totalorder %s24_s6, %s24_s6 }
  0x26   :  { %p448_p0 = scmp.ne.s32.totalorder %s24_s6, %s447_s23  ;;  %p453_p2 = scmp.lt.s32.totalorder %s447_s23, %s447_s23 }
  0x28   :  { %p454_p3 = por %p453_p2, %p452_p1 }
  0x2a   :  { %p455_p4 = pnand %p454_p3, %p448_p0 }
  0x2c   :  { %458 = shalt.err (!%p455_p4)
}
  0x2d   :  { %26 = dma.hbm_to_vmem [thread:$0]  %s643_s1, 128, %s24_s6, [#allocation9]  }
  0x2e   :  { %s514_s25 = smov [#allocation13]   ;;  %s459_s29 = scalar_lea.hbm %s646_s4, 128 }
  0x2f   :  { %s45_s26 = sshll.u32 %s514_s25, 4  ;;  %p460_p5 = scmp.ne.s32.totalorder %s646_s4, %s459_s29  ;;  %s46_s26 = int_to_ptr.vmem [resolvable:$true] %s45_s26 }
  0x30   :  { %p463_p6 = scmp.lt.u32.totalorder %s459_s29, %s646_s4 }
  0x32   :  { %p465_p7 = pnand %p463_p6, %p460_p5 }
  0x34   :  { %468 = shalt.err (!%p465_p7)
}
  0x35   :  { %s469_s10 = scalar_lea.vmem %s46_s26, 128  ;;  %p474_p9 = scmp.lt.s32.totalorder %s46_s26, %s46_s26 }
  0x36   :  { %p470_p8 = scmp.ne.s32.totalorder %s46_s26, %s469_s10  ;;  %p475_p10 = scmp.lt.s32.totalorder %s469_s10, %s469_s10 }
  0x38   :  { %p476_p11 = por %p475_p10, %p474_p9 }
  0x3a   :  { %p477_p12 = pnand %p476_p11, %p470_p8 }
  0x3c   :  { %480 = shalt.err (!%p477_p12)
}
  0x3d   :  { %48 = dma.hbm_to_vmem [thread:$0]  %s646_s4, 128, %s46_s26, [#allocation12]  }
  0x3e   :  { %505 = dma.done.wait [#allocation9], 128  }
  0x3f   :  { %506 = vsyncadd [#allocation9], 4294967168 }
  0x40   :  { %507 = dma.done.wait [#allocation12], 256  }
  0x41   :  { %508 = vsyncadd [#allocation12], 4294967040  ;;  %v515_v0 = vmov 0.0   ;;  %vm516_vm0 = vmmov 0   ;;  %vm70_vm1 = vcmask 523264   ;;  %vm152_vm2 = vcmask 261120  }
  0x42   :  { %369 = vmatprep.subr.mxu0 %v515_v0  ;;  %374 = vmatprep.subr.mxu1 %v515_v0  ;;  %v69_v1 = vld [vmem:[%s645_s3] sm:$0xff]  ;;  %v68_v3 = vld [vmem:[#allocation8] sm:$0xff]  ;;  %v150_v4 = vld [vmem:[#allocation11] sm:$0xff]  ;;  %vm62_vm3 = vcmask 57344   ;;  %v517_v5 = vmov -1e+30   ;;  %v299_v18 = vlaneseq }
  0x43   :  { %371 = vmatprep.mubr.msk.f32.mxu0 %vm516_vm0, %v515_v0  ;;  %376 = vmatprep.mubr.msk.f32.mxu1 %vm516_vm0, %v515_v0  ;;  %v151_v2 = vld [vmem:[#allocation13] sm:$0xff]  ;;  %63 = vst.msk [vmem:[#allocation2] sm:$0x1] %vm62_vm3, %v517_v5  ;;  %64 = vst.msk [vmem:[#allocation3] sm:$0x1] %vm62_vm3, %v515_v0  ;;  %s147_s4 = sld [smem:[#allocation7]] }
  0x44   :  { %370 = vmatpush3.xpose.msk.msra.mxu0 %vm70_vm1, %v69_v1  ;;  %375 = vmatpush3.xpose.msk.msra.mxu1 %vm152_vm2, %v151_v2  ;;  %65 = vst.msk [vmem:[#allocation4] sm:$0x1] %vm62_vm3, %v515_v0  ;;  %s364_s12 = sld [smem:[#allocation7 + $0x1]]  ;;  %vm232_vm4 = vcmask 64512   ;;  %v300_v21 = vshrl.u32 %v299_v18, 7  ;;  %vm66_vm5 = vcmask 0  }
  0x45   :  { %67 = vst.msk [vmem:[#allocation5] sm:$0x1] %vm66_vm5, %v515_v0  ;;  %s518_s14 = smov [#allocation14]  }
  0x46   :  { %v301_v25 = vsub.s32 0, %v300_v21  ;;  %s350_s15 = sshll.u32 %s518_s14, 4  ;;  %s351_s15 = int_to_ptr.vmem [resolvable:$true] %s350_s15 }
  0x47   :  { %372 = vmatmul.mubr.msk.f32.vlgmr.msra.gmra.mrb[0].mxu0 %vm70_vm1, %v68_v3  ;;  %377 = vmatmul.mubr.msk.f32.vlgmr.msra.gmra.mrb[0].mxu1 %vm152_vm2, %v150_v4  ;;  %s481_s16 = scalar_lea.vmem %s351_s15, 16  ;;  %s485_s17 = scalar_lea.vmem %s351_s15, 32 }
  0x48   :  { %p482_p13 = scmp.ne.s32.totalorder %s351_s15, %s481_s16  ;;  %p486_p0 = scmp.lt.s32.totalorder %s351_s15, %s351_s15 }
  0x49   :  { %v148_v6 = vstv %s147_s4  ;;  %p487_p1 = scmp.lt.s32.totalorder %s485_s17, %s481_s16 }
  0x4a   :  { %v230_v7 = vstv %s364_s12  ;;  %v291_v23 = vld [vmem:[#allocation2] sm:$0x1]  ;;  %v293_v39 = vld [vmem:[#allocation3] sm:$0x1] }
  0x4b   :  { %p488_p2 = por %p487_p1, %p486_p0 }
  0x4d   :  { %p489_p3 = pnand %p488_p2, %p482_p13 }
 0x11a   :  { %v143_v8 = vpop.f32.mrb[0].mxu0  ;;  %v225_v9 = vpop.f32.mrb[0].mxu1 }
 0x11b   :  { %v149_v10 = vmul.f32 %v148_v6, %v143_v8  ;;  %v609_v11 = vmul.f32 %v230_v7, %v225_v9  ;;  %v373_v12 = vpop.f32.mrb[1].mxu0  ;;  %v378_v13 = vpop.f32.mrb[1].mxu1  ;;  %v274_v9 = vld [vmem:[#allocation4] sm:$0x1] }
 0x11d   :  { %v233_v14 = vsel %vm232_vm4, %v149_v10, -inf  ;;  %v244_v15 = vsel %vm232_vm4, %v609_v11, -inf  ;;  %v257_v2 = vmul.f32 2.0, %v609_v11 }
 0x11e   :  { %234 = vmax.xlane.f32.xlu0 %v233_v14  ;;  %v285_v16 = vrot.slane %v244_v15, 4 }
 0x120   :  { %v286_v17 = vmax.f32 %v244_v15, %v285_v16 }
 0x122   :  { %v287_v19 = vrot.slane %v286_v17, 2  ;;  %245 = vmax.xlane.f32.xlu0 %v244_v15 }
 0x124   :  { %v288_v20 = vmax.f32 %v286_v17, %v287_v19 }
 0x126   :  { %v289_v22 = vrot.slane %v288_v20, 1 }
 0x128   :  { %v290_v24 = vmax.f32 %v288_v20, %v289_v22 }
 0x12a   :  { %v292_v26 = vmax.f32 %v291_v23, %v290_v24 }
 0x12c   :  { %v302_v27 = vrot.slane %v292_v26, %v301_v25  ;;  %316 = vst.msk [vmem:[#allocation2] sm:$0x1] %vm62_vm3, %v292_v26  ;;  %v294_v30 = vsub.f32 %v291_v23, %v292_v26 }
 0x12e   :  { %v304_v28 = vsub.f32 %v609_v11, %v302_v27  ;;  %v295_v31 = vmul.f32 1.442695, %v294_v30 }
 0x130   :  { %v305_v29 = vmul.f32 1.442695, %v304_v28 }
 0x132   :  { %391 = vpow2.f32 %v305_v29 }
 0x133   :  { %393 = vpow2.f32 %v295_v31  ;;  %v320_v15 = vld [vmem:[#allocation2] sm:$0x1] }
 0x13c   :  { %v392_v32 = vpop.eup %391 }
 0x13d   :  { %v307_v33 = vsel %vm232_vm4, %v392_v32, 0.0  ;;  %v394_v38 = vpop.eup %393 }
 0x13e   :  { %v308_v34 = vrot.slane %v307_v33, 4  ;;  %v297_v42 = vmul.f32 %v394_v38, %v293_v39 }
 0x140   :  { %v309_v35 = vadd.f32 %v308_v34, %v307_v33  ;;  %v256_v33 = vld [vmem:[#allocation5] sm:$0x1] }
 0x142   :  { %v310_v36 = vrot.slane %v309_v35, 2 }
 0x144   :  { %v311_v37 = vadd.f32 %v310_v36, %v309_v35 }
 0x146   :  { %v312_v40 = vrot.slane %v311_v37, 1 }
 0x148   :  { %v313_v41 = vadd.f32 %v312_v40, %v311_v37 }
 0x14a   :  { %v314_v43 = vadd.f32 %v313_v41, %v297_v42 }
 0x14c   :  { %315 = vst.msk [vmem:[#allocation3] sm:$0x1] %vm62_vm3, %v314_v43 }
 0x153   :  { %v321_v61 = vld [vmem:[#allocation3] sm:$0x1] }
 0x1ab   :  { %v235_v44 = vpop.xlane.xlu0 %234 }
 0x1ac   :  { %v236_v45 = vsub.f32 %v149_v10, %v235_v44 }
 0x1ae   :  { %v237_v46 = vmul.f32 1.442695, %v236_v45 }
 0x1af   :  { %v246_v47 = vpop.xlane.xlu0 %245 }
 0x1b0   :  { %395 = vpow2.f32 %v237_v46  ;;  %v247_v48 = vsub.f32 %v609_v11, %v246_v47 }
 0x1b2   :  { %v248_v49 = vmul.f32 1.442695, %v247_v48 }
 0x1b4   :  { %397 = vpow2.f32 %v248_v49 }
 0x1ba   :  { %v396_v50 = vpop.eup %395 }
 0x1bb   :  { %v239_v51 = vsel %vm232_vm4, %v396_v50, 0.0 }
 0x1bc   :  { %240 = vadd.xlane.f32.xlu1 %v239_v51 }
 0x1be   :  { %v398_v52 = vpop.eup %397 }
 0x1bf   :  { %v250_v53 = vsel %vm232_vm4, %v398_v52, 0.0 }
 0x1c0   :  { %251 = vadd.xlane.f32.xlu1 %v250_v53 }
 0x249   :  { %v241_v54 = vpop.xlane.xlu1 %240 }
 0x24a   :  { %399 = vrcp.f32 %v241_v54 }
 0x24d   :  { %v252_v55 = vpop.xlane.xlu1 %251 }
 0x24e   :  { %401 = vlog2.f32 %v252_v55 }
 0x24f   :  { %403 = vlog2.f32 %v321_v61 }
 0x254   :  { %v400_v56 = vpop.eup %399 }
 0x255   :  { %v243_v57 = vmul.f32 %v400_v56, %v396_v50 }
 0x257   :  { %v275_v58 = vsel %vm232_vm4, %v243_v57, 0.0 }
 0x258   :  { %v402_v59 = vpop.eup %401  ;;  %v276_v60 = vrot.slane %v275_v58, 4 }
 0x259   :  { %v254_v62 = vmul.f32 0.6931472, %v402_v59  ;;  %v404_v13 = vpop.eup %403 }
 0x25a   :  { %v277_v63 = vadd.f32 %v276_v60, %v275_v58  ;;  %v323_v14 = vmul.f32 0.6931472, %v404_v13 }
 0x25b   :  { %v255_v1 = vadd.f32 %v254_v62, %v246_v47 }
 0x25c   :  { %v278_v3 = vrot.slane %v277_v63, 2  ;;  %v324_v16 = vadd.f32 %v323_v14, %v320_v15 }
 0x25d   :  { %v258_v4 = vsub.f32 %v257_v2, %v255_v1 }
 0x25e   :  { %v279_v5 = vadd.f32 %v278_v3, %v277_v63 }
 0x25f   :  { %v259_v6 = vmul.f32 %v258_v4, %v243_v57 }
 0x260   :  { %v280_v7 = vrot.slane %v279_v5, 1 }
 0x261   :  { %v260_v8 = vsel %vm232_vm4, %v259_v6, 0.0 }
 0x262   :  { %v281_v10 = vadd.f32 %v280_v7, %v279_v5  ;;  %261 = vadd.xlane.f32.xlu0 %v260_v8 }
 0x264   :  { %v282_v12 = vadd.f32 %v281_v10, %v274_v9 }
 0x266   :  { %284 = vst.msk [vmem:[#allocation4] sm:$0x1] %vm62_vm3, %v282_v12 }
 0x26d   :  { %v326_v17 = vld [vmem:[#allocation4] sm:$0x1] }
 0x26e   :  { %v327_v11 = vmul.f32 %v326_v17, %v324_v16 }
 0x270   :  { %v328_v18 = vsel %vm62_vm3, %v327_v11, 0.0 }
 0x271   :  { %329 = vadd.xlane.f32.xlu1 %v328_v18 }
 0x2ef   :  { %v262_v19 = vpop.xlane.xlu0 %261 }
 0x2f0   :  { %v263_v20 = vrot.slane %v262_v19, 4 }
 0x2f2   :  { %v264_v21 = vadd.f32 %v263_v20, %v262_v19 }
 0x2f4   :  { %v265_v22 = vrot.slane %v264_v21, 2 }
 0x2f6   :  { %v266_v23 = vadd.f32 %v265_v22, %v264_v21 }
 0x2f8   :  { %v267_v24 = vrot.slane %v266_v23, 1 }
 0x2fa   :  { %v268_v25 = vadd.f32 %v267_v24, %v266_v23 }
 0x2fc   :  { %379 = vpush %v268_v25 }
 0x2fe   :  { %v330_v26 = vpop.xlane.xlu1 %329 }
 0x2ff   :  { %v331_v27 = vrot.slane %v330_v26, 4 }
 0x301   :  { %v332_v28 = vadd.f32 %v331_v27, %v330_v26 }
 0x303   :  { %v333_v29 = vrot.slane %v332_v28, 2 }
 0x305   :  { %v334_v30 = vadd.f32 %v333_v29, %v332_v28 }
 0x307   :  { %v335_v31 = vrot.slane %v334_v30, 1 }
 0x309   :  { %v336_v32 = vadd.f32 %v335_v31, %v334_v30 }
 0x30b   :  { %381 = vpush %v336_v32 }
 0x32d   :  { %s380_s3 = spop %379 }
 0x32e   :  { %v270_v34 = vstv %s380_s3 }
 0x32f   :  { %v271_v0 = vadd.f32 %v270_v34, %v256_v33 }
 0x331   :  { %273 = vst.msk [vmem:[#allocation5] sm:$0x1] %vm66_vm5, %v271_v0 }
 0x338   :  { %v325_v35 = vld [vmem:[#allocation5] sm:$0x1] }
 0x33c   :  { %s382_s13 = spop %381 }
 0x33d   :  { %v338_v36 = vstv %s382_s13 }
 0x33e   :  { %v339_v37 = vsub.f32 %v325_v35, %v338_v36 }
 0x340   :  { %v340_v38 = vsub.f32 0.0, %v339_v37 }
 0x342   :  { %v342_v39 = vmul.f32 0.0625, %v340_v38 }
 0x344   :  { %343 = vst.msk [vmem:[#allocation14] sm:$0x1] %vm66_vm5, %v342_v39 }
 0x345   :  { %492 = shalt.err (!%p489_p3)
}
 0x346   :  { %s493_s20 = scalar_lea.hbm %s647_s5, 16 }
 0x347   :  { %p494_p4 = scmp.ne.s32.totalorder %s647_s5, %s493_s20  ;;  %p497_p5 = scmp.lt.u32.totalorder %s493_s20, %s647_s5 }
 0x349   :  { %p499_p6 = pnand %p497_p5, %p494_p4 }
 0x34b   :  { %502 = shalt.err (!%p499_p6)
}
 0x34c   :  { %353 = dma.vmem_to_hbm [thread:$0]  %s351_s15, 16, %s647_s5, [#allocation10]  }
 0x34d   :  { %509 = dma.done.wait [#allocation10], 16  }
 0x34e   :  { %510 = vsyncadd [#allocation10], 4294967280 }
 0x34f   :  { %357 = vsyncpa [#allocation9], 1 }
 0x350   :  { %358 = vsyncpa [#allocation12], 1 }
 0x351   :  { %359 = vsyncpa [#allocation10], 1 }

</bundles_post_ra>
